<compile_context>
chip_gen: v7x
topology: tpu7x:2x2x1
jax: 0.10.0
libtpu: 0.0.40
codegen_flags: <defaults>
</compile_context>

<pallas_src>
import jax
import jax.numpy as jnp
import numpy as np
from jax.experimental import pallas as pl
from jax.experimental.pallas import tpu as pltpu


# ----------------------------------------------------------------------------
# Kernel body
# ----------------------------------------------------------------------------
def _make_kernel(nnei: int, nh: int):
    K = nnei * nh

    def kernel(e_ref, aa_ref, h2_ref, out_ref):
        # e_ref  : (K, nnei)       head weights folded into block-diag E
        # aa_ref : (tb, nnei, K)   AA in native layout (lane-dense, K last)
        # h2_ref : (tb, 3, nnei)   h2, lane dim = nnei
        # out_ref: (tb, 3, nnei)
        tb = aa_ref.shape[0]

        # Step 1: single MXU matmul contracting K = nnei*nh (heads folded in).
        # The (tb, nnei, K) -> (tb*nnei, K) reshape is free when nnei % 8 == 0
        # (sublane-aligned merge of the leading dims); otherwise the compiler
        # inserts a relayout copy -- still correct.
        aa2d = aa_ref[...].reshape(tb * nnei, K)
        aw = jnp.dot(aa2d, e_ref[...],
                     preferred_element_type=jnp.float32)       # (tb*nnei, nnei)
        aw = aw.reshape(tb, nnei, nnei)

        # Step 2: batched (3, nnei) x (nnei, nnei) contraction per (frame, loc)
        # pair, producing the lane-dense (tb, 3, nnei) output directly.
        # TODO(synk): optional bf16 cast of the step-1 operands (f32 accum)
        # would help MXU-bound v5e configs at the cost of ~1e-3 accuracy.
        out = jnp.einsum("bdj,bij->bdi", h2_ref[...], aw,
                         preferred_element_type=jnp.float32)   # (tb, 3, nnei)
        out_ref[...] = out.astype(out_ref.dtype)

    return kernel


# ----------------------------------------------------------------------------
# Tiling / hardware heuristics
# ----------------------------------------------------------------------------
def _ceil_to(x: int, m: int) -> int:
    return -(-x // m) * m


def _hw_config():
    """(target AA tile bytes, scoped vmem_limit_bytes) per TPU generation."""
    kind = ""
    try:
        kind = jax.devices()[0].device_kind.lower()
    except Exception:
        pass
    if "v7" in kind or "7x" in kind:
        # v7x: 64 MiB/TC physical VMEM, ~3.2 TB/s per-TC HBM -> mid-size tiles,
        # keep headroom under the 64 MiB ceiling.
        return 10 << 20, 48 << 20
    if "v5e" in kind or "v5 lite" in kind or "v5lite" in kind:
        # v5e: ~820 GB/s HBM; 8 MiB tiles already make per-step overhead <4%,
        # keep VMEM pressure low for the f32 AW intermediate.
        return 8 << 20, 96 << 20
    # v6e / other 128-MiB-VMEM parts, ~1.4 TB/s HBM.
    return 14 << 20, 96 << 20


def _pick_tb(B: int, nnei: int, nh: int, *, vmem_budget: int,
             target_aa_bytes: int, min_grid_steps: int = 8) -> int:
    """How many (frame, loc) pairs per grid step.

    Honest VMEM accounting: 2x double-buffered AA / h2 / out blocks (with lane
    and sublane padding of the last two dims), the f32 AW intermediate, and E.
    """
    K = nnei * nh
    itm = 4  # f32 bytes
    aa_b = _ceil_to(nnei, 8) * _ceil_to(K, 128) * itm      # one AA slab per b
    io_b = _ceil_to(3, 8) * _ceil_to(nnei, 128) * itm      # one (3, nnei) slab
    aw_b = _ceil_to(nnei, 8) * _ceil_to(nnei, 128) * itm   # AW intermediate
    e_sz = _ceil_to(K, 8) * _ceil_to(nnei, 128) * itm      # E (resident)

    per_b = 2 * aa_b + 2 * io_b + 2 * io_b + aw_b          # 2x AA, 2x h2, 2x out, AW
    fixed = 2 * e_sz

    tb_vmem = max(1, (vmem_budget - fixed) // per_b)
    tb_bw = max(1, target_aa_bytes // aa_b)
    tb = int(min(tb_vmem, tb_bw, B))

    # Keep the grid at >= ~min_grid_steps so the BlockSpec double-buffer hides
    # DMA and both v7x TensorCores get work under the "parallel" split.
    if B >= min_grid_steps:
        tb = min(tb, max(1, B // min_grid_steps))
    return max(1, tb)


# ----------------------------------------------------------------------------
# Public wrapper
# ----------------------------------------------------------------------------
def atten2_equivar_apply(AA, h2, head_w):
    """Pallas implementation of Atten2EquiVarApply.forward.

    AA:     (nf, nloc, nnei, nnei, nh) float32
    h2:     (nf, nloc, nnei, 3)        float32
    head_w: weight of Linear(nh, 1, bias=False) (shape (nh,) or (1, nh))
    returns (nf, nloc, nnei, 3)
    """
    nf, nloc, nnei, _, nh = AA.shape
    B = nf * nloc
    K = nnei * nh

    # Contiguous (free) reshape -- AA stays in its native HBM layout.
    aa3 = AA.reshape(B, nnei, K)
    # Tiny wrapper-side transpose so the kernel's h2/out lane dim is nnei.
    h2t = jnp.transpose(h2.reshape(B, nnei, 3), (0, 2, 1))        # (B, 3, nnei)

    # Fold head weights into a block-diagonal expansion matrix:
    #   E[j*nh + h, j'] = w[h] * (j == j')
    w = head_w.reshape(-1).astype(AA.dtype)
    E = (jnp.eye(nnei, dtype=AA.dtype)[:, None, :]
         * w[None, :, None]).reshape(K, nnei)

    target_aa_bytes, vmem_limit = _hw_config()
    tb = _pick_tb(B, nnei, nh,
                  vmem_budget=int(vmem_limit * 0.7),
                  target_aa_bytes=target_aa_bytes)
    grid = (pl.cdiv(B, tb),)

    out_t = pl.pallas_call(
        _make_kernel(nnei, nh),
        out_shape=jax.ShapeDtypeStruct((B, 3, nnei), h2.dtype),
        grid=grid,
        in_specs=[
            pl.BlockSpec((K, nnei), lambda g: (0, 0)),            # E (tiny, resident)
            pl.BlockSpec((tb, nnei, K), lambda g: (g, 0, 0)),     # AA, native layout
            pl.BlockSpec((tb, 3, nnei), lambda g: (g, 0, 0)),     # h2 (lane = nnei)
        ],
        out_specs=pl.BlockSpec((tb, 3, nnei), lambda g: (g, 0, 0)),
        compiler_params=pltpu.CompilerParams(
            dimension_semantics=("parallel",),
            vmem_limit_bytes=vmem_limit,
        ),
    )(E, aa3, h2t)

    # Wrapper-side layout plumbing back to the module's (nf, nloc, nnei, 3).
    return jnp.transpose(out_t, (0, 2, 1)).reshape(nf, nloc, nnei, 3)


# ----------------------------------------------------------------------------
# Pure-JAX reference (follows the PyTorch op order exactly)
# ----------------------------------------------------------------------------
def ref_forward(AA, h2, head_w):
    nf, nloc, nnei, _ = h2.shape
    nh = AA.shape[-1]
    AAp = jnp.transpose(AA, (0, 1, 4, 2, 3))                      # (nf,nloc,nh,nnei,nnei)
    h2m = jnp.broadcast_to(h2[:, :, None], (nf, nloc, nh, nnei, 3))
    ret = jnp.matmul(AAp, h2m)                                    # (nf,nloc,nh,nnei,3)
    ret = jnp.transpose(ret, (0, 1, 3, 4, 2))                     # (nf,nloc,nnei,3,nh)
    return jnp.einsum("flidh,h->flid", ret, head_w.reshape(-1))


if __name__ == "__main__":
    # small shapes consistent with the module: nf=2, nloc=8, nnei=16, nh=4
    nf, nloc, nnei, nh = 2, 8, 16, 4

    key = jax.random.PRNGKey(0)
    k_aa, k_h2, k_w = jax.random.split(key, 3)

    AA = jax.random.normal(k_aa, (nf, nloc, nnei, nnei, nh), dtype=jnp.float32)
    h2 = jax.random.normal(k_h2, (nf, nloc, nnei, 3), dtype=jnp.float32)
    # deterministic init of head_map (Linear(nh, 1, bias=False)) weight, flattened
    head_w = 0.5 * jax.random.normal(k_w, (nh,), dtype=jnp.float32)

    out = atten2_equivar_apply(AA, h2, head_w)
    jax.block_until_ready(out)

    ref = ref_forward(AA, h2, head_w)
    np.testing.assert_allclose(np.asarray(out), np.asarray(ref),
                               rtol=1e-4, atol=1e-4)
    print("KERNEL_OK")
</pallas_src>

<mosaic_0001>
module attributes {stable_mosaic.version = 11 : i64} {
  func.func @kernel(%arg0: i32, %arg1: memref<64x16xf32, #tpu.memory_space<vmem>>, %arg2: memref<2x16x64xf32, #tpu.memory_space<vmem>>, %arg3: memref<2x3x16xf32, #tpu.memory_space<vmem>>, %arg4: memref<2x3x16xf32, #tpu.memory_space<vmem>>) attributes {dimension_semantics = [#tpu.dimension_semantics<parallel>], iteration_bounds = array<i64: 8>, scalar_prefetch = 0 : i64, scratch_operands = 0 : i64, tpu.core_type = #tpu.core_type<tc>, window_params = [{pipeline_mode = #tpu.pipeline_mode<synchronous>, transform_indices = @transform_0, window_bounds = array<i64: 64, 16>}, {transform_indices = @transform_1, window_bounds = array<i64: 2, 16, 64>}, {transform_indices = @transform_2, window_bounds = array<i64: 2, 3, 16>}, {transform_indices = @transform_3, window_bounds = array<i64: 2, 3, 16>}]} {
    %c0 = arith.constant 0 : index
    %c0_0 = arith.constant 0 : index
    %c0_1 = arith.constant 0 : index
    %0 = vector.load %arg2[%c0, %c0_0, %c0_1] : memref<2x16x64xf32, #tpu.memory_space<vmem>>, vector<2x16x64xf32>
    %1 = vector.shape_cast %0 : vector<2x16x64xf32> to vector<32x64xf32>
    %c0_2 = arith.constant 0 : index
    %c0_3 = arith.constant 0 : index
    %2 = vector.load %arg1[%c0_2, %c0_3] : memref<64x16xf32, #tpu.memory_space<vmem>>, vector<64x16xf32>
    %cst = arith.constant dense<0.000000e+00> : vector<32x16xf32>
    %3 = tpu.matmul %1, %2, %cst {dimension_numbers = #tpu.dot_dimension_numbers<[1], [0], [0], [1], [0, 0, 1, 1], [], []>} : vector<32x64xf32>, vector<64x16xf32>, vector<32x16xf32> -> vector<32x16xf32>
    %4 = vector.shape_cast %3 : vector<32x16xf32> to vector<2x16x16xf32>
    %c0_4 = arith.constant 0 : index
    %c0_5 = arith.constant 0 : index
    %c0_6 = arith.constant 0 : index
    %5 = vector.load %arg3[%c0_4, %c0_5, %c0_6] : memref<2x3x16xf32, #tpu.memory_space<vmem>>, vector<2x3x16xf32>
    "tpu.trace_start"() <{level = 10 : i32, message = "bdj,bij->bdi"}> : () -> ()
    %cst_7 = arith.constant dense<0.000000e+00> : vector<2x3x16xf32>
    %6 = tpu.matmul %5, %4, %cst_7 {dimension_numbers = #tpu.dot_dimension_numbers<[2], [2], [1], [1], [0, 0, 0, 1, 1, 1], [0], [0]>} : vector<2x3x16xf32>, vector<2x16x16xf32>, vector<2x3x16xf32> -> vector<2x3x16xf32>
    "tpu.trace_stop"() : () -> ()
    %c0_8 = arith.constant 0 : index
    %c0_9 = arith.constant 0 : index
    %c0_10 = arith.constant 0 : index
    %7 = vector.load %arg4[%c0_8, %c0_9, %c0_10] : memref<2x3x16xf32, #tpu.memory_space<vmem>>, vector<2x3x16xf32>
    tpu.vector_store %arg4[%c0_8, %c0_9, %c0_10], %6 {strides = array<i32>} : memref<2x3x16xf32, #tpu.memory_space<vmem>>, vector<2x3x16xf32>,
    return
  }
  func.func @transform_0(%arg0: i32) -> (i32, i32) {
    %c0_i32 = arith.constant 0 : i32
    %c0_i32_0 = arith.constant 0 : i32
    %c0_i32_1 = arith.constant 0 : i32
    return %c0_i32, %c0_i32_0 : i32, i32
  }
  func.func @transform_1(%arg0: i32) -> (i32, i32, i32) {
    %c0_i32 = arith.constant 0 : i32
    %c0_i32_0 = arith.constant 0 : i32
    %c0_i32_1 = arith.constant 0 : i32
    return %arg0, %c0_i32, %c0_i32_0 : i32, i32, i32
  }
  func.func @transform_2(%arg0: i32) -> (i32, i32, i32) {
    %c0_i32 = arith.constant 0 : i32
    %c0_i32_0 = arith.constant 0 : i32
    %c0_i32_1 = arith.constant 0 : i32
    return %arg0, %c0_i32, %c0_i32_0 : i32, i32, i32
  }
  func.func @transform_3(%arg0: i32) -> (i32, i32, i32) {
    %c0_i32 = arith.constant 0 : i32
    %c0_i32_0 = arith.constant 0 : i32
    %c0_i32_1 = arith.constant 0 : i32
    return %arg0, %c0_i32, %c0_i32_0 : i32, i32, i32
  }
}

</mosaic_0001>

<bundles_post_ra>
// kernel: tpu_custom_call.1
= control target key start
LH: loop header
LB: loop body
LE: loop exit
PB: predicated region body
PF: predicated region fallthrough
CT: control target
= control target key end

     0   :  { %8 = vsyncpa [#allocation3], 0  ;;  %s1271_s0 = inlined_call_operand.hbm [shape: f32[64,16], index: 0, kind: input, shape index: {}]   ;;  %s1272_s1 = inlined_call_operand.hbm [shape: f32[16,16,64], index: 1, kind: input, shape index: {}]   ;;  %s1273_s2 = inlined_call_operand.hbm [shape: f32[16,3,16], index: 2, kind: input, shape index: {}]   ;;  %s1274_s3 = inlined_call_operand.hbm [shape: f32[16,3,16], index: 3, kind: output, shape index: {}]  }
   0x1   :  { %9 = vsyncpa [#allocation6], 0 }
   0x2   :  { %11 = vsyncpa [#allocation6 + $0x1], 0 }
   0x3   :  { %12 = vsyncpa [#allocation4], 0 }
   0x4   :  { %14 = vsyncpa [#allocation4 + $0x1], 0  ;;  %s1015_s12 = smov 0   ;;  %s1017_s13 = smov 0  }
   0x5   :  { %s1019_s14 = smov 0   ;;  %s1021_s15 = smov 0  }
   0x6 LB: > { %s1036_s16 = sadd.s32 1, %s980_s15   ;;  %s48_s17 = sadd.s32 1, %s976_s14  ;;  %s980_s15 = sphi %s1021_s15, %s1298_s15   ;;  %s976_s14 = sphi %s1019_s14, %s1297_s14   ;;  %s972_s13 = sphi %s1017_s13, %s1296_s13   ;;  %s968_s12 = sphi %s1015_s12, %s1295_s12  }
   0x7   : > { %s45_s18 = ssub.s32 %s980_s15, %s1036_s16  ;;  %p55_p0 = scmp.ne.s32.totalorder %s976_s14, %s972_s13 }
   0x8   : > { %p46_p1 = scmp.eq.s32.totalorder %s45_s18, 0  ;;  %p56_p2 = scmp.eq.s32.totalorder %s980_s15, 0 }
   0x9   : > { %p777_p4 = scmp.lt.s32.totalorder %s980_s15, 8  ;;  %s150_s20 = sand.u32 1, %s980_s15  }
   0xa   : > { %s1045_s19 = scalar_select %p46_p1, %s976_s14, %s48_s17  }
   0xb   : > { %p57_p3 = por %p56_p2, %p55_p0  ;;  %s152_s21 = sand.u32 1, %s976_s14  }
   0xc   : > { %s642_s22 = sshll.u32 %s152_s21, 5  ;;  %s670_s23 = sshll.u32 %s980_s15, 9 }
   0xd   : > { %s1057_s26 = scalar_lea.hbm %s1272_s1, %s670_s23  ;;  %s154_s27 = scalar_lea.vmem [#allocation5], %s642_s22 }
   0xe   : > { %s162_s28 = sshll.u32 %s154_s27, 4  ;;  %p1059_p5 = pnand %p777_p4, %p57_p3  ;;  %s1063_s28 = int_to_ptr.vmem [resolvable:$true] %s162_s28 }
   0xf   : > { %s1065_s30 = sshll.u32 %s152_s21, 3  ;;  %s1067_s4 = scalar_lea.sflag [#allocation6], %s150_s20 }
  0x10   : > { %s822_s5 = scalar_lea.hbm %s1057_s26, 512  ;;  %p824_p7 = pneg %p1059_p5 }
  0x11   : > { %p823_p6 = scmp.ne.s32.totalorder %s1057_s26, %s822_s5  ;;  %s827_s8 = scalar_lea.hbm %s1272_s1, 4096 }
  0x12   : > { %p828_p10 = scmp.lt.u32.totalorder %s1057_s26, %s1272_s1  ;;  %p829_p11 = scmp.lt.u32.totalorder %s827_s8, %s822_s5 }
  0x13   : > { %p825_p8 = pnand %p824_p7, %p823_p6  ;;  %p831_p13 = scmp.lt.u32.totalorder %s822_s5, %s1057_s26 }
  0x14   : > { %p830_p12 = por %p829_p11, %p828_p10 }
  0x15   : > { %p826_p9 = pneg %p825_p8 }
  0x16   : > { %p832_p1 = por %p831_p13, %p830_p12 }
  0x18   : > { %p833_p2 = pnand %p832_p1, %p826_p9 }
  0x1a   : > { %836 = shalt.err (!%p833_p2)
}
  0x1b   : > { %s837_s11 = scalar_lea.vmem %s1063_s28, 512  ;;  %s982_s17 = smov [#allocation5]  }
  0x1c   : > { %p838_p3 = scmp.ne.s32.totalorder %s1063_s28, %s837_s11  ;;  %s842_s18 = sshll.u32 %s982_s17, 4  ;;  %s843_s18 = int_to_ptr.vmem [resolvable:$false] %s842_s18 }
  0x1d   : > { %s844_s20 = scalar_lea.vmem %s843_s18, 1024  ;;  %p845_p8 = scmp.lt.s32.totalorder %s1063_s28, %s843_s18 }
  0x1e   : > { %p840_p4 = pnand %p838_p3, %p824_p7  ;;  %p846_p10 = scmp.lt.s32.totalorder %s844_s20, %s837_s11 }
  0x20   : > { %p841_p6 = pneg %p840_p4  ;;  %p847_p11 = por %p846_p10, %p845_p8 }
  0x22   : > { %p848_p12 = pnand %p847_p11, %p841_p6 }
  0x24   : > { %851 = shalt.err (!%p848_p12)
}
  0x25   : > { %s1279_s21 = smov 128   ;;  %s1280_s22 = smov 8  }
  0x26   : > { %768 = dma.hbm_to_vmem [thread:$0]  (!%p1059_p5), %s1057_s26, 512, %s1063_s28, %s1067_s4, %s1279_s21, %s1279_s21, %s1280_s22  }
  0x27   : > { %s176_s23 = scalar_lea.vmem [#allocation7], %s1065_s30  ;;  %s1100_s25 = sadd.s32 4294967295, %s980_s15  }
  0x28   : > { %s183_s24 = sshll.u32 %s176_s23, 4  ;;  %s638_s27 = sadd.s32 4294967294, %s980_s15   ;;  %s1140_s24 = int_to_ptr.vmem [resolvable:$true] %s183_s24 }
  0x29   : > { %p61_p9 = scmp.ne.s32.totalorder %s972_s13, %s968_s12  ;;  %p1275_p13 = scmp.eq.s32.totalorder %s1100_s25, 0 }
  0x2a   : > { %p111_p1 = scmp.eq.s32.totalorder %s1100_s25, 7  ;;  %p117_p2 = scmp.eq.s32.totalorder %s638_s27, 7 }
  0x2b   : > { %p639_p3 = scmp.ge.s32.totalorder %s980_s15, 1  ;;  %p1110_p4 = por %p1275_p13, %p61_p9 }
  0x2c   : > { %p1117_p6 = por %p111_p1, %p55_p0  ;;  %p1121_p8 = por %p117_p2, %p61_p9 }
  0x2d   : > { %s1282_s5 = scalar_select %p1110_p4, 1, 0 }
  0x2e   : > { %s1283_s26 = scalar_select %p1117_p6, 1, 0 }
  0x2f   : > { %s1284_s28 = scalar_select %p1121_p8, 1, 0 }
  0x30   : > { %p124_p10 = scmp.lt.s32.totalorder %s980_s15, 9  ;;  %s985_s6 = smov [#allocation2]  }
  0x31   : > { %s136_s7 = sshll.u32 %s985_s6, 4  ;;  %s671_s8 = sshll.u32 %s980_s15, 7  ;;  %s1130_s7 = int_to_ptr.vmem [resolvable:$true] %s136_s7 }
  0x32   : > { %p1126_p11 = pnand %p639_p3, %p124_p10  ;;  %s1138_s11 = scalar_lea.hbm %s1273_s2, %s671_s8 }
  0x33   : > { %s852_s18 = scalar_lea.hbm %s1138_s11, 128  ;;  %s857_s27 = scalar_lea.hbm %s1273_s2, 1024 }
  0x34   : > { %s1285_s30 = scalar_select %p1126_p11, 1, 0 }
  0x35   : > { %p761_p0 = pneg %p1126_p11  ;;  %p853_p9 = scmp.ne.s32.totalorder %s1138_s11, %s852_s18 }
  0x36   : > { %p858_p3 = scmp.lt.u32.totalorder %s1138_s11, %s1273_s2  ;;  %p859_p10 = scmp.lt.u32.totalorder %s857_s27, %s852_s18 }
  0x37   : > { %p1144_p12 = pnand %p761_p0, %p1275_p13  ;;  %p855_p1 = pnand %p853_p9, %p824_p7 }
  0x38   : > { %p860_p8 = por %p859_p10, %p858_p3  ;;  %p861_p0 = scmp.lt.u32.totalorder %s852_s18, %s1138_s11 }
  0x39   : > { %p856_p2 = pneg %p855_p1 }
  0x3a   : > { %p862_p13 = por %p861_p0, %p860_p8 }
  0x3c   : > { %p863_p6 = pnand %p862_p13, %p856_p2 }
  0x3e   : > { %866 = shalt.err (!%p863_p6)
}
  0x3f   : > { %s867_s9 = scalar_lea.vmem %s1140_s24, 128  ;;  %s986_s10 = smov [#allocation7]  }
  0x40   : > { %p868_p9 = scmp.ne.s32.totalorder %s1140_s24, %s867_s9  ;;  %s872_s20 = sshll.u32 %s986_s10, 4  ;;  %s873_s20 = int_to_ptr.vmem [resolvable:$false] %s872_s20 }
  0x41   : > { %s874_s23 = scalar_lea.vmem %s873_s20, 256  ;;  %p875_p11 = scmp.lt.s32.totalorder %s1140_s24, %s873_s20 }
  0x42   : > { %p870_p1 = pnand %p868_p9, %p824_p7  ;;  %p876_p3 = scmp.lt.s32.totalorder %s874_s23, %s867_s9 }
  0x44   : > { %p871_p4 = pneg %p870_p1  ;;  %p877_p10 = por %p876_p3, %p875_p11 }
  0x46   : > { %p878_p8 = pnand %p877_p10, %p871_p4 }
  0x48   : > { %881 = shalt.err (!%p878_p8)
}
  0x49   : > { %s987_s18 = smov 64   ;;  %s988_s27 = smov 4  }
  0x4a   : > { %771 = dma.hbm_to_vmem [thread:$0]  (!%p1059_p5), %s1138_s11, 128, %s1140_s24, %s1067_s4, %s987_s18, %s987_s18, %s988_s27  }
  0x4b   : > { %s882_s10 = scalar_lea.hbm %s1271_s0, 1024  ;;  %p884_p13 = pneg %p1144_p12 }
  0x4c   : > { %p883_p7 = scmp.ne.s32.totalorder %s1271_s0, %s882_s10  ;;  %p889_p11 = scmp.lt.u32.totalorder %s882_s10, %s1271_s0 }
  0x4e   : > { %p885_p4 = pnand %p884_p13, %p883_p7 }
  0x50   : > { %p886_p6 = pneg %p885_p4 }
  0x52   : > { %p891_p2 = pnand %p889_p11, %p886_p6 }
  0x54   : > { %894 = shalt.err (!%p891_p2)
}
  0x55   : > { %s895_s29 = scalar_lea.vmem %s1130_s7, 1024  ;;  %p903_p1 = scmp.lt.s32.totalorder %s1130_s7, %s1130_s7 }
  0x56   : > { %p896_p5 = scmp.ne.s32.totalorder %s1130_s7, %s895_s29  ;;  %p904_p3 = scmp.lt.s32.totalorder %s895_s29, %s895_s29 }
  0x58   : > { %p898_p0 = pnand %p896_p5, %p884_p13  ;;  %p905_p10 = por %p904_p3, %p903_p1 }
  0x5a   : > { %p899_p9 = pneg %p898_p0 }
  0x5c   : > { %p906_p8 = pnand %p905_p10, %p899_p9 }
  0x5e   : > { %909 = shalt.err (!%p906_p8)
}
  0x5f   : > { %s1287_s4 = smov 8   ;;  %s1288_s21 = smov 128  }
  0x60   : > { %764 = dma.hbm_to_vmem [thread:$0]  (!%p1144_p12), %s1271_s0, 1024, %s1130_s7, [#allocation3], %s1288_s21, %s1288_s21, %s1287_s4  }
  0x61   : > { %p1289_p7 = scmp.ne.s32.totalorder %s1285_s30, 0 }
  0x62   : > { %p1290_p13 = scmp.eq.s32.totalorder (!%p1289_p7), %s1100_s25, 0 }
  0x63   : > { %195 = sbr.rel (%p1289_p7) target bundleno = 588 (0x24c), region = 32 }
  0x6a   : > { %955 = dma.done.wait (%p1290_p13), [#allocation3], 1024   ;;  %p1291_p4 = pmov %p1290_p13 }
  0x6b   : > { %s201_s11 = sand.u32 1, %s1100_s25   ;;  %s1204_s17 = sand.u32 1, %s972_s13  }
  0x6c   : > { %957 = vsyncadd (%p1291_p4), [#allocation3], 4294966272  ;;  %s651_s23 = sshll.u32 %s1204_s17, 5  ;;  %s202_s18 = scalar_lea.sflag [#allocation6], %s201_s11 }
  0x6d   : > { %s205_s27 = scalar_lea.vmem [#allocation5], %s651_s23  ;;  %p1292_p12 = scmp.ne.s32.totalorder %s1282_s5, 0 }
  0x6f   : > { %959 = dma.done.wait (%p1292_p12), %s202_s18, 640  }
  0x70   : > { %961 = vsyncadd (%p1292_p12), %s202_s18, 4294966656  ;;  %v249_v0 = vld [vmem:[#allocation2] sm:$0xff]  ;;  %v250_v1 = vld [vmem:[#allocation2 + $0x8] sm:$0xff]  ;;  %vm257_vm0 = vcmask 523264   ;;  %v989_v16 = vmov 0.0|0.0   ;;  %vm990_vm1 = vmmov 0  }
  0x71   : > { %v251_v2 = vld [vmem:[#allocation2 + $0x10] sm:$0xff]  ;;  %v727_v3 = vpack.c.bf16 %v250_v1, %v249_v0  ;;  %v252_v4 = vld [vmem:[#allocation2 + $0x18] sm:$0xff]  ;;  %v253_v6 = vld [vmem:[#allocation2 + $0x20] sm:$0xff]  ;;  %743 = vmatprep.subr.bf16.mxu1 %v989_v16  ;;  %v991_v17 = vmov 0.0   ;;  %vm357_vm2 = vcmask 130048   ;;  %s652_s5 = sshll.u32 %s1204_s17, 3 }
  0x72   : > { %v731_v5 = vpack.c.bf16 %v252_v4, %v251_v2  ;;  %v254_v7 = vld [vmem:[#allocation2 + $0x28] sm:$0xff]  ;;  %v245_v8 = vld [vmem:[%s205_s27] sm:$0xff]  ;;  %v255_v10 = vld [vmem:[#allocation2 + $0x30] sm:$0xff]  ;;  %717 = vmatprep.mubr.msk.f32.mxu1 %vm990_vm1, %v991_v17  ;;  %s214_s30 = scalar_lea.vmem [#allocation7], %s652_s5  ;;  %vm516_vm4 = vcmask 124928   ;;  %s241_s7 = scalar_lea.vmem [#allocation8], %s652_s5 }
  0x73   : > { %728 = vmatprep.subr.bf16.mxu0 %v727_v3  ;;  %707 = vmatprep.mubr.msk.f32.mxu0 %vm257_vm0, %v245_v8  ;;  %v735_v9 = vpack.c.bf16 %v254_v7, %v253_v6  ;;  %v256_v11 = vld [vmem:[#allocation2 + $0x38] sm:$0xff]  ;;  %v246_v13 = vld [vmem:[%s205_s27 + $0x8] sm:$0xff]  ;;  %v247_v14 = vld [vmem:[%s205_s27 + $0x10] sm:$0xff]  ;;  %s533_s6 = sshll.u32 %s241_s7, 4  ;;  %s672_s8 = sshll.u32 %s1100_s25, 7  ;;  %s1223_s6 = int_to_ptr.vmem [resolvable:$true] %s533_s6 }
  0x74   : > { %730 = vmatpush3.bf16.msra.mxu0 %v727_v3  ;;  %v739_v12 = vpack.c.bf16 %v256_v11, %v255_v10  ;;  %v248_v15 = vld [vmem:[%s205_s27 + $0x18] sm:$0xff]  ;;  %vm745_vm3 = vmpackc.low %vm357_vm2, %vm357_vm2  ;;  %v355_v24 = vld [vmem:[%s214_s30] sm:$0x7]  ;;  %s1228_s20 = scalar_lea.hbm %s1274_s3, %s672_s8  ;;  %s520_s29 = scalar_lea.sflag [#allocation4], %s1204_s17 }
  0x75   : > { %732 = vmatprep.subr.bf16.mxu0 %v731_v5  ;;  %v356_v25 = vld [vmem:[%s214_s30 + $0x4] sm:$0x7]  ;;  %s910_s4 = scalar_lea.vmem %s1223_s6, 128  ;;  %p1293_p11 = scmp.ne.s32.totalorder %s1283_s26, 0 }
  0x76   : > { %p911_p6 = scmp.ne.s32.totalorder %s1223_s6, %s910_s4  ;;  %s992_s25 = smov [#allocation8]  }
  0x77   : > { %s914_s21 = sshll.u32 %s992_s25, 4  ;;  %s915_s21 = int_to_ptr.vmem [resolvable:$false] %s914_s21 }
  0x78   : > { %734 = vmatpush3.bf16.msra.mxu0 %v731_v5  ;;  %p912_p2 = pnand %p911_p6, %p1293_p11  ;;  %s916_s22 = scalar_lea.vmem %s915_s21, 256 }
  0x79   : > { %736 = vmatprep.subr.bf16.mxu0 %v735_v9  ;;  %p917_p0 = scmp.lt.s32.totalorder %s1223_s6, %s915_s21  ;;  %p918_p9 = scmp.lt.s32.totalorder %s916_s22, %s910_s4 }
  0x7a   : > { %p913_p5 = pneg %p912_p2 }
  0x7b   : > { %p919_p1 = por %p918_p9, %p917_p0 }
  0x7c   : > { %738 = vmatpush3.bf16.msra.mxu0 %v735_v9 }
  0x7d   : > { %740 = vmatprep.subr.bf16.mxu0 %v739_v12  ;;  %p920_p3 = pnand %p919_p1, %p913_p5 }
  0x80   : > { %742 = vmatpush3.bf16.msra.mxu0 %v739_v12 }
  0x83   : > { %708 = vmatmul.mubr.msk.f32.vlgmr.msra.gmra.mrb[0].mxu0 %vm257_vm0, %v246_v13 }
  0x84   : > { %710 = vmatprep.mubr.msk.f32.mxu0 %vm257_vm0, %v247_v14 }
  0x87   : > { %711 = vmatmul.mubr.msk.f32.gmra.mrb[2].mxu0 %vm257_vm0, %v248_v15 }
 0x156   : > { %v709_v18 = vpop.f32.mrb[0].mxu0 }
 0x157   : > { %v336_v19 = vpop.f32.mrb[1].mxu0 }
 0x158   : > { %v744_v20 = vpack.c.bf16 %v709_v18, %v336_v19 }
 0x15a   : > { %746 = vmatpush3.bf16.xpose.msk.msra.mxu1 %vm745_vm3, %v744_v20  ;;  %v712_v21 = vpop.f32.mrb[2].mxu0 }
 0x15b   : > { %v346_v22 = vpop.f32.mrb[3].mxu0  ;;  %747 = vmatprep.subr.bf16.mxu1 %v989_v16 }
 0x15c   : > { %v748_v23 = vpack.c.bf16 %v712_v21, %v346_v22 }
 0x161   : > { %718 = vmatmul.mubr.msk.f32.vlgmr.msra.gmra.mrb[0].mxu1 %vm357_vm2, %v355_v24 }
 0x162   : > { %750 = vmatpush3.bf16.xpose.msk.msra.mxu1 %vm745_vm3, %v748_v23  ;;  %724 = vmatprep.mubr.msk.f32.mxu1 %vm990_vm1, %v991_v17 }
 0x169   : > { %725 = vmatmul.mubr.msk.f32.vlgmr.msra.gmra.mrb[2].mxu1 %vm357_vm2, %v356_v25 }
 0x234   : > { %v433_v26 = vpop.f32.mrb[0].mxu1 }
 0x235   : > { %517 = vst.msk [vmem:[%s241_s7] sm:$0x7] %vm516_vm4, %v433_v26  ;;  %v719_v27 = vpop.f32.mrb[1].mxu1 }
 0x23c   : > { %v512_v28 = vpop.f32.mrb[2].mxu1 }
 0x23d   : > { %518 = vst.msk [vmem:[%s241_s7 + $0x4] sm:$0x7] %vm516_vm4, %v512_v28  ;;  %v726_v29 = vpop.f32.mrb[3].mxu1 }
 0x23e   : > { %923 = shalt.err (!%p920_p3)
}
 0x23f   : > { %s924_s24 = scalar_lea.hbm %s1228_s20, 128  ;;  %s928_s18 = scalar_lea.hbm %s1274_s3, 1024 }
 0x240   : > { %p925_p10 = scmp.ne.s32.totalorder %s1228_s20, %s924_s24  ;;  %p929_p13 = scmp.lt.u32.totalorder %s1228_s20, %s1274_s3 }
 0x241   : > { %p930_p4 = scmp.lt.u32.totalorder %s928_s18, %s924_s24  ;;  %p932_p6 = scmp.lt.u32.totalorder %s924_s24, %s1228_s20 }
 0x242   : > { %p926_p8 = pnand %p925_p10, %p1293_p11 }
 0x243   : > { %p931_p12 = por %p930_p4, %p929_p13 }
 0x244   : > { %p927_p7 = pneg %p926_p8 }
 0x245   : > { %p933_p2 = por %p932_p6, %p931_p12 }
 0x247   : > { %p934_p5 = pnand %p933_p2, %p927_p7 }
 0x249   : > { %937 = shalt.err (!%p934_p5)
}
 0x24a   : > { %s993_s30 = smov 64   ;;  %s994_s7 = smov 4  }
 0x24b   : > { %759 = dma.vmem_to_hbm [thread:$0]  (%p1293_p11), %s1223_s6, 128, %s1228_s20, %s520_s29, %s993_s30, %s993_s30, %s994_s7  }
 0x24c PF: > { %p779_p0 = scmp.ge.s32.totalorder %s980_s15, 2  ;;  %s548_s8 = sand.u32 1, %s968_s12  }
 0x24d   : > { %p1294_p9 = scmp.ne.s32.totalorder %s1284_s28, 0  ;;  %s549_s10 = scalar_lea.sflag [#allocation4], %s548_s8 }
 0x24f   : > { %p773_p1 = pnand %p779_p0, %p1294_p9 }
 0x251   : > { %963 = dma.done.wait (!%p773_p1), %s549_s10, 128  }
 0x252   : > { %965 = vsyncadd (!%p773_p1), %s549_s10, 4294967168  ;;  %p17_p3 = scmp.ge.s32.totalorder %s1036_s16, 10   ;;  %s1295_s12 = smov %s972_s13 }
 0x253   : > { %s1296_s13 = smov %s976_s14  ;;  %s1297_s14 = smov %s1045_s19 }
 0x254   : > { %s1298_s15 = smov %s1036_s16  ;;  %19 = sbr.rel (!%p17_p3) target bundleno = 6 (0x6), region = 93 }
 0x25b   :  { %554 = vsyncpa [#allocation3], 1 }
 0x25c   :  { %556 = vsyncpa [#allocation3 + $0x1], 1 }
 0x25d   :  { %557 = vsyncpa [#allocation6], 1 }
 0x25e   :  { %559 = vsyncpa [#allocation6 + $0x1], 1 }
 0x25f   :  { %560 = vsyncpa [#allocation4], 1 }
 0x260   :  { %562 = vsyncpa [#allocation4 + $0x1], 1 }

</bundles_post_ra>
